<compile_context>
chip_gen: v7x
topology: tpu7x:2x2x1
jax: 0.10.0
libtpu: 0.0.40
codegen_flags: <defaults>
</compile_context>

<pallas_src>
import functools

import jax
import jax.numpy as jnp
from jax import lax
from jax.experimental import pallas as pl
from jax.experimental.pallas import tpu as pltpu


def _round_up(x: int, m: int) -> int:
    return (x + m - 1) // m * m


def _vmem_budget_bytes() -> int:
    """Per-generation VMEM budget (scoped limit) with headroom."""
    try:
        cap = int(pltpu.get_tpu_info().vmem_capacity_bytes)
    except Exception:
        cap = 64 << 20  # conservative: v7x has 64 MiB per TensorCore
    # ~70% of physical: 44.8 MiB on v7x, 89.6 MiB on v5e/v6e.
    return max(24 << 20, min(int(cap * 0.7), 96 << 20))


# --------------------------------------------------------------------------
# Kernels
# --------------------------------------------------------------------------
def _gram_single_kernel(x_ref, o_ref, acc_ref, *, scale, tk, k_dim, nk_half,
                        nk, ragged):
    """One (M, M) output tile; X @ X.T accumulated over K blocks.

    Grid = (ksplit, nk_half): `ksplit` partial Grams (parallel axis -> both
    v7x TensorCores), `nk_half` K blocks each (reduction, innermost).
    The single input block is used for BOTH matmul operands (DMA dedup).
    """
    del nk  # only used by the index map
    p = pl.program_id(0)
    k = pl.program_id(1)

    @pl.when(k == 0)
    def _init():
        acc_ref[...] = jnp.zeros_like(acc_ref)

    x = x_ref[...]
    if ragged:
        # Zero columns beyond K.  Covers (a) the ragged last K block (clipped
        # DMA leaves stale VMEM past K) and (b) the grid-padding step of an
        # odd K-block count (index_map clamps the block index; the mask kills
        # its whole contribution).
        kb = p * nk_half + k                      # intended global K block
        col = lax.broadcasted_iota(jnp.int32, x.shape, 1) + kb * tk
        x = jnp.where(col < k_dim, x, jnp.zeros_like(x))

    # X @ X.T: contract dim 1 of both operands -> no materialized transpose.
    acc_ref[...] += lax.dot_general(
        x, x,
        dimension_numbers=(((1,), (1,)), ((), ())),
        preferred_element_type=jnp.float32)

    @pl.when(k == nk_half - 1)
    def _finalize():
        o_ref[...] = (acc_ref[...] * scale).astype(o_ref.dtype)


def _gram_pair_kernel(ii_ref, jj_ref, xr_ref, xc_ref, o_ref, acc_ref,
                      *, scale, tk, k_dim, nk, ragged):
    """Upper-triangular tile pair (ii[t], jj[t]) of the symmetric Gram."""
    del ii_ref, jj_ref  # consumed by the index maps only
    k = pl.program_id(1)

    @pl.when(k == 0)
    def _init():
        acc_ref[...] = jnp.zeros_like(acc_ref)

    xr = xr_ref[...]
    xc = xc_ref[...]
    if ragged:
        # Mask BOTH operands (stale VMEM past K could be NaN/Inf; 0*NaN = NaN).
        col = lax.broadcasted_iota(jnp.int32, xr.shape, 1) + k * tk
        valid = col < k_dim
        xr = jnp.where(valid, xr, jnp.zeros_like(xr))
        xc = jnp.where(valid, xc, jnp.zeros_like(xc))

    acc_ref[...] += lax.dot_general(
        xr, xc,
        dimension_numbers=(((1,), (1,)), ((), ())),
        preferred_element_type=jnp.float32)

    @pl.when(k == nk - 1)
    def _finalize():
        o_ref[...] = (acc_ref[...] * scale).astype(o_ref.dtype)


# --------------------------------------------------------------------------
# Wrappers
# --------------------------------------------------------------------------
def _gram_single_tile(feature, m_rows, k_dim, scale, budget):
    """M <= 1024: one output tile; feature is DMA'd exactly once overall."""
    dtype = feature.dtype
    in_bytes = jnp.dtype(dtype).itemsize
    m = m_rows

    # Row-pad only if M is not sublane aligned (rare; zero rows are exact and
    # the padded output rows/cols are sliced off below).
    mp = _round_up(m, 8)
    if mp != m:
        feature = jnp.pad(feature, ((0, mp - m), (0, 0)))

    # K tile: as large as the VMEM budget allows, capped at 2048, x128.
    c128 = _round_up(mp, 128)
    fixed = mp * c128 * 4 + 2 * mp * c128 * in_bytes     # f32 acc + out dbl-buf
    avail = max(budget - fixed, 4 << 20)
    tk_cap = max(512, (avail // (2 * mp * in_bytes)) // 128 * 128)
    tk = int(min(2048, _round_up(k_dim, 128), tk_cap))

    nk = pl.cdiv(k_dim, tk)
    ksplit = 2 if nk >= 2 else 1          # engage both v7x TensorCores
    nk_half = pl.cdiv(nk, ksplit)
    ragged = (k_dim % tk != 0) or (ksplit * nk_half != nk)

    kernel = functools.partial(
        _gram_single_kernel, scale=scale, tk=tk, k_dim=k_dim,
        nk_half=nk_half, nk=nk, ragged=ragged)

    def x_map(p, k):
        # Clamp so the grid-padding step (odd K-block count) re-reads the last
        # valid block; its contribution is fully masked out in the kernel.
        return (0, jnp.minimum(p * nk_half + k, nk - 1))

    cost = pl.CostEstimate(
        flops=2 * mp * mp * ksplit * nk_half * tk,
        transcendentals=0,
        bytes_accessed=(mp * ksplit * nk_half * tk * in_bytes
                        + ksplit * mp * mp * in_bytes))

    out = pl.pallas_call(
        kernel,
        out_shape=jax.ShapeDtypeStruct((ksplit, mp, mp), dtype),
        grid_spec=pltpu.PrefetchScalarGridSpec(
            num_scalar_prefetch=0,
            grid=(ksplit, nk_half),
            in_specs=[pl.BlockSpec((mp, tk), x_map)],      # single input spec
            out_specs=pl.BlockSpec((None, mp, mp), lambda p, k: (p, 0, 0)),
            scratch_shapes=[pltpu.VMEM((mp, mp), jnp.float32)],
        ),
        compiler_params=pltpu.CompilerParams(
            dimension_semantics=("parallel", "arbitrary"),
            vmem_limit_bytes=int(budget),
        ),
        cost_estimate=cost,
    )(feature)

    if ksplit == 1:
        g = out[0]
    else:
        # scale was applied per partial; scale*(A+B) == scale*A + scale*B.
        g = out.astype(jnp.float32).sum(axis=0).astype(dtype)
    if mp != m:
        g = g[:m, :m]
    return g


def _gram_symmetric(feature, m_rows, k_dim, scale, budget):
    """M > 1024: tile-level symmetry — upper-triangular tile pairs only."""
    dtype = feature.dtype
    in_bytes = jnp.dtype(dtype).itemsize
    m = m_rows

    tm = 512
    nm = pl.cdiv(m, tm)
    # Flattened upper-triangular (i <= j) tile-pair indices (scalar-prefetched).
    ii_list, jj_list = [], []
    for i in range(nm):
        for j in range(i, nm):
            ii_list.append(i)
            jj_list.append(j)
    n_pairs = len(ii_list)
    ii = jnp.asarray(ii_list, dtype=jnp.int32)
    jj = jnp.asarray(jj_list, dtype=jnp.int32)

    fixed = tm * tm * 4 + 2 * tm * tm * in_bytes
    avail = max(budget - fixed, 4 << 20)
    tk_cap = max(512, (avail // (4 * tm * in_bytes)) // 128 * 128)
    tk = int(min(2048, _round_up(k_dim, 128), tk_cap))
    nk = pl.cdiv(k_dim, tk)
    ragged = (k_dim % tk) != 0

    kernel = functools.partial(
        _gram_pair_kernel, scale=scale, tk=tk, k_dim=k_dim, nk=nk,
        ragged=ragged)

    cost = pl.CostEstimate(
        flops=2 * n_pairs * tm * tm * nk * tk,
        transcendentals=0,
        bytes_accessed=(2 * n_pairs * nk * tm * tk * in_bytes
                        + n_pairs * tm * tm * in_bytes))

    out = pl.pallas_call(
        kernel,
        out_shape=jax.ShapeDtypeStruct((m, m), dtype),
        grid_spec=pltpu.PrefetchScalarGridSpec(
            num_scalar_prefetch=2,
            grid=(n_pairs, nk),
            in_specs=[
                pl.BlockSpec((tm, tk), lambda t, k, ii_r, jj_r: (ii_r[t], k)),
                pl.BlockSpec((tm, tk), lambda t, k, ii_r, jj_r: (jj_r[t], k)),
            ],
            out_specs=pl.BlockSpec(
                (tm, tm), lambda t, k, ii_r, jj_r: (ii_r[t], jj_r[t])),
            scratch_shapes=[pltpu.VMEM((tm, tm), jnp.float32)],
        ),
        compiler_params=pltpu.CompilerParams(
            dimension_semantics=("arbitrary", "arbitrary"),
            vmem_limit_bytes=int(budget),
        ),
        cost_estimate=cost,
    )(ii, jj, feature, feature)

    # Only upper-triangular tiles were written (lower tiles hold garbage that
    # triu zeroes); mirror the strict upper triangle -> exactly symmetric.
    upper = jnp.triu(out)
    return upper + jnp.triu(out, 1).T


def gram(x_nchw: jax.Array) -> jax.Array:
    """Gram matrix of an NCHW tensor, matching the PyTorch `Gram` module."""
    a, b, c, d = x_nchw.shape
    m_rows = a * b
    k_dim = c * d
    scale = 1.0 / float(a * b * c * d)
    feature = x_nchw.reshape(m_rows, k_dim)      # glue reshape in plain JAX
    budget = _vmem_budget_bytes()
    if m_rows <= 1024:
        return _gram_single_tile(feature, m_rows, k_dim, scale, budget)
    return _gram_symmetric(feature, m_rows, k_dim, scale, budget)


# --------------------------------------------------------------------------
# Reference + test driver
# --------------------------------------------------------------------------
def _reference(x):
    a, b, c, d = x.shape
    feat = x.reshape(a * b, c * d)
    return jnp.matmul(feat, feat.T,
                      precision=lax.Precision.HIGHEST) / (a * b * c * d)


if __name__ == "__main__":
    key = jax.random.PRNGKey(0)

    shapes = [
        (2, 4, 16, 16),    # M=8,    K=256   single tile, one K block
        (2, 4, 33, 33),    # M=8,    K=1089  ragged K block (in-kernel mask)
        (2, 160, 16, 16),  # M=320,  K=256   larger single tile
        (1, 2, 64, 128),   # M=2,    K=8192  row-pad + 2-way K split, 2 steps
        (1, 8, 50, 100),   # M=8,    K=5000  odd K-block count -> clamp + mask
        (3, 512, 8, 8),    # M=1536, K=64    symmetric multi-tile path
    ]

    for shp in shapes:
        key, sub = jax.random.split(key)
        x = jax.random.normal(sub, shp, dtype=jnp.float32)
        g = jax.block_until_ready(gram(x))
        ref = _reference(x)
        m = shp[0] * shp[1]
        assert g.shape == (m, m), (g.shape, shp)
        assert jnp.allclose(g, ref, atol=1e-5, rtol=1e-5), f"mismatch @ {shp}"

    print("KERNEL_OK")
</pallas_src>

<mosaic_0001>
module attributes {stable_mosaic.version = 11 : i64} {
  func.func @_gram_single_kernel(%arg0: i32, %arg1: i32, %arg2: memref<8x256xf32, #tpu.memory_space<vmem>>, %arg3: memref<1x8x8xf32, #tpu.memory_space<vmem>>, %arg4: memref<8x8xf32, #tpu.memory_space<vmem>>) attributes {dimension_semantics = [#tpu.dimension_semantics<parallel>, #tpu.dimension_semantics<arbitrary>], iteration_bounds = array<i64: 1, 1>, scalar_prefetch = 0 : i64, scratch_operands = 1 : i64, tpu.core_type = #tpu.core_type<tc>, window_params = [{transform_indices = @transform_0, window_bounds = array<i64: 8, 256>}, {transform_indices = @transform_1, window_bounds = array<i64: 1, 8, 8>}]} {
    %c0_i32 = arith.constant 0 : i32
    %0 = arith.cmpi eq, %arg1, %c0_i32 : i32
    %1 = arith.extui %0 : i1 to i32
    %c0_i32_0 = arith.constant 0 : i32
    %2 = arith.cmpi ne, %1, %c0_i32_0 : i32
    scf.if %2 {
      %cst_8 = arith.constant 0.000000e+00 : f32
      %11 = vector.broadcast %cst_8 : f32 to vector<8x8xf32>
      %c0_9 = arith.constant 0 : index
      %c0_10 = arith.constant 0 : index
      %12 = vector.load %arg4[%c0_9, %c0_10] : memref<8x8xf32, #tpu.memory_space<vmem>>, vector<8x8xf32>
      tpu.vector_store %arg4[%c0_9, %c0_10], %11 {strides = array<i32>} : memref<8x8xf32, #tpu.memory_space<vmem>>, vector<8x8xf32>,
    } else {
    }
    %c0 = arith.constant 0 : index
    %c0_1 = arith.constant 0 : index
    %3 = vector.load %arg2[%c0, %c0_1] : memref<8x256xf32, #tpu.memory_space<vmem>>, vector<8x256xf32>
    %c0_2 = arith.constant 0 : index
    %c0_3 = arith.constant 0 : index
    %4 = vector.load %arg4[%c0_2, %c0_3] : memref<8x8xf32, #tpu.memory_space<vmem>>, vector<8x8xf32>
    %cst = arith.constant dense<0.000000e+00> : vector<8x8xf32>
    %5 = tpu.matmul %3, %3, %cst {dimension_numbers = #tpu.dot_dimension_numbers<[1], [1], [0], [0], [0, 0, 1, 0], [], []>} : vector<8x256xf32>, vector<8x256xf32>, vector<8x8xf32> -> vector<8x8xf32>
    %6 = arith.addf %4, %5 : vector<8x8xf32>
    %c0_4 = arith.constant 0 : index
    %c0_5 = arith.constant 0 : index
    %7 = vector.load %arg4[%c0_4, %c0_5] : memref<8x8xf32, #tpu.memory_space<vmem>>, vector<8x8xf32>
    tpu.vector_store %arg4[%c0_4, %c0_5], %6 {strides = array<i32>} : memref<8x8xf32, #tpu.memory_space<vmem>>, vector<8x8xf32>,
    %c0_i32_6 = arith.constant 0 : i32
    %8 = arith.cmpi eq, %arg1, %c0_i32_6 : i32
    %9 = arith.extui %8 : i1 to i32
    %c0_i32_7 = arith.constant 0 : i32
    %10 = arith.cmpi ne, %9, %c0_i32_7 : i32
    scf.if %10 {
      %c0_8 = arith.constant 0 : index
      %c0_9 = arith.constant 0 : index
      %11 = vector.load %arg4[%c0_8, %c0_9] : memref<8x8xf32, #tpu.memory_space<vmem>>, vector<8x8xf32>
      %cst_10 = arith.constant 4.8828125E-4 : f32
      %12 = vector.broadcast %cst_10 : f32 to vector<8x8xf32>
      %13 = arith.mulf %11, %12 : vector<8x8xf32>
      %c0_11 = arith.constant 0 : index
      %c0_12 = arith.constant 0 : index
      %c0_13 = arith.constant 0 : index
      %14 = vector.load %arg3[%c0_11, %c0_12, %c0_13] : memref<1x8x8xf32, #tpu.memory_space<vmem>>, vector<1x8x8xf32>
      %15 = vector.shape_cast %14 : vector<1x8x8xf32> to vector<8x8xf32>
      %16 = vector.shape_cast %13 : vector<8x8xf32> to vector<1x8x8xf32>
      tpu.vector_store %arg3[%c0_11, %c0_12, %c0_13], %16 {strides = array<i32>} : memref<1x8x8xf32, #tpu.memory_space<vmem>>, vector<1x8x8xf32>,
    } else {
    }
    return
  }
  func.func @transform_0(%arg0: i32, %arg1: i32) -> (i32, i32) {
    %c1_i32 = arith.constant 1 : i32
    %0 = arith.muli %arg0, %c1_i32 : i32
    %1 = arith.addi %0, %arg1 : i32
    %c0_i32 = arith.constant 0 : i32
    %2 = arith.minsi %1, %c0_i32 : i32
    %c0_i32_0 = arith.constant 0 : i32
    %c0_i32_1 = arith.constant 0 : i32
    return %c0_i32_0, %2 : i32, i32
  }
  func.func @transform_1(%arg0: i32, %arg1: i32) -> (i32, i32, i32) {
    %c0_i32 = arith.constant 0 : i32
    %c0_i32_0 = arith.constant 0 : i32
    %c0_i32_1 = arith.constant 0 : i32
    return %arg0, %c0_i32, %c0_i32_0 : i32, i32, i32
  }
}

</mosaic_0001>

<bundles_post_ra>
// kernel: tpu_custom_call.1
= control target key start
LH: loop header
LB: loop body
LE: loop exit
PB: predicated region body
PF: predicated region fallthrough
CT: control target
= control target key end

     0   :  { %6 = vsyncpa [#allocation4], 0  ;;  %s227_s0 = inlined_call_operand.hbm [shape: f32[8,256], index: 0, kind: input, shape index: {}]   ;;  %s228_s1 = inlined_call_operand.hbm [shape: f32[1,8,8], index: 1, kind: output, shape index: {}]  }
   0x1   :  { %7 = vsyncpa [#allocation5], 0  ;;  %s187_s6 = smov [#allocation3]   ;;  %s139_s10 = scalar_lea.hbm %s227_s0, 256 }
   0x2   :  { %s20_s7 = sshll.u32 %s187_s6, 4  ;;  %p140_p0 = scmp.ne.s32.totalorder %s227_s0, %s139_s10  ;;  %s21_s7 = int_to_ptr.vmem [resolvable:$true] %s20_s7 }
   0x3   :  { %p143_p1 = scmp.lt.u32.totalorder %s139_s10, %s227_s0 }
   0x5   :  { %p145_p2 = pnand %p143_p1, %p140_p0 }
   0x7   :  { %148 = shalt.err (!%p145_p2)
}
   0x8   :  { %s149_s15 = scalar_lea.vmem %s21_s7, 256  ;;  %p154_p4 = scmp.lt.s32.totalorder %s21_s7, %s21_s7 }
   0x9   :  { %p150_p3 = scmp.ne.s32.totalorder %s21_s7, %s149_s15  ;;  %p155_p5 = scmp.lt.s32.totalorder %s149_s15, %s149_s15 }
   0xb   :  { %p156_p6 = por %p155_p5, %p154_p4 }
   0xd   :  { %p157_p7 = pnand %p156_p6, %p150_p3 }
   0xf   :  { %160 = shalt.err (!%p157_p7)
}
  0x10   :  { %23 = dma.hbm_to_vmem [thread:$0]  %s227_s0, 256, %s21_s7, [#allocation4]  }
  0x11   :  { %183 = dma.done.wait [#allocation4], 256  }
  0x12   :  { %184 = vsyncadd [#allocation4], 4294967040  ;;  %vm35_vm0 = vcmask 64512   ;;  %v188_v0 = vmov 0.0   ;;  %v38_v1 = vld [vmem:[#allocation3 + $0x8] sm:$0xff]  ;;  %v37_v2 = vld [vmem:[#allocation3] sm:$0xff] }
  0x13   :  { %36 = vst.msk [vmem:[#allocation2] sm:$0xff] %vm35_vm0, %v188_v0  ;;  %40 = vmatprep.subr.mxu0 %v38_v1  ;;  %104 = vmatprep.mubr.f32.mxu0 %v38_v1  ;;  %s189_s18 = smov [#allocation6]  }
  0x14   :  { %41 = vmatpush1.xpose.msra.mxu0 %v37_v2  ;;  %s125_s0 = sshll.u32 %s189_s18, 4  ;;  %s126_s0 = int_to_ptr.vmem [resolvable:$true] %s125_s0 }
  0x15   :  { %s161_s19 = scalar_lea.vmem %s126_s0, 128  ;;  %p166_p9 = scmp.lt.s32.totalorder %s126_s0, %s126_s0 }
  0x16   :  { %p162_p8 = scmp.ne.s32.totalorder %s126_s0, %s161_s19  ;;  %p167_p10 = scmp.lt.s32.totalorder %s161_s19, %s161_s19 }
  0x17   :  { %105 = vmatmul.mubr.f32.vlgmr.msra.gmra.mrb[0].mxu0 %v37_v2 }
  0x18   :  { %p168_p11 = por %p167_p10, %p166_p9 }
  0x1a   :  { %v39_v3 = vld [vmem:[#allocation2] sm:$0xff]  ;;  %p169_p12 = pnand %p168_p11, %p162_p8 }
  0xea   :  { %v106_v4 = vpop.f32.mrb[0].mxu0 }
  0xeb   :  { %v110_v5 = vadd.f32 %v106_v4, %v39_v3  ;;  %v108_v6 = vpop.f32.mrb[1].mxu0 }
  0xed   :  { %112 = vst.msk [vmem:[#allocation2] sm:$0xff] %vm35_vm0, %v110_v5 }
  0xf4   :  { %v116_v7 = vld [vmem:[#allocation2] sm:$0xff] }
  0xf5   :  { %v117_v8 = vmul.f32 0.00048828125, %v116_v7 }
  0xf7   :  { %118 = vst.msk [vmem:[#allocation6] sm:$0xff] %vm35_vm0, %v117_v8 }
  0xf8   :  { %172 = shalt.err (!%p169_p12)
}
  0xf9   :  { %s173_s22 = scalar_lea.hbm %s228_s1, 128 }
  0xfa   :  { %p174_p13 = scmp.ne.s32.totalorder %s228_s1, %s173_s22  ;;  %p177_p0 = scmp.lt.u32.totalorder %s173_s22, %s228_s1 }
  0xfc   :  { %p179_p1 = pnand %p177_p0, %p174_p13 }
  0xfe   :  { %182 = shalt.err (!%p179_p1)
}
  0xff   :  { %128 = dma.vmem_to_hbm [thread:$0]  %s126_s0, 128, %s228_s1, [#allocation5]  }
 0x100   :  { %185 = dma.done.wait [#allocation5], 128  }
 0x101   :  { %186 = vsyncadd [#allocation5], 4294967168 }
 0x102   :  { %132 = vsyncpa [#allocation4], 1 }
 0x103   :  { %133 = vsyncpa [#allocation5], 1 }

</bundles_post_ra>
